<compile_context>
chip_gen: v7x
topology: tpu7x:2x2x1
jax: 0.10.0
libtpu: 0.0.40
codegen_flags: <defaults>
</compile_context>

<pallas_src>
import functools

import jax
import jax.numpy as jnp
from jax.experimental import pallas as pl
from jax.experimental.pallas import tpu as pltpu


def _conv_pool_kernel(a_ref, b_ref, w_ref, out_ref, stats_ref, *, TH, W, Cin, Cpad):
    """Fused 3x3 conv (9-tap accumulation) + 2x2/stride-2 max-pool + partial BN stats.

    a_ref:     (1, TH, W+2, Cin)   main rows of the zero-padded NHWC input tile
    b_ref:     (1, 2,  W+2, Cin)   2-row bottom halo (same HBM array, offset index_map)
    w_ref:     (9, Cin, Cpad)      conv weights laid out (kh*3+kw, cin, cout_padded)
    out_ref:   (1, THp*Wp, Cpad)   pooled conv output rows for this tile
    stats_ref: (1, 2, Cpad)        per-tile [sum, sum_of_squares] of the pooled rows
    """
    THp, Wp = TH // 2, W // 2
    x = jnp.concatenate([a_ref[0], b_ref[0]], axis=0)            # (TH+2, W+2, Cin)

    acc = jnp.zeros((TH * W, Cpad), jnp.float32)
    for kh in range(3):
        for kw in range(3):
            win = x[kh:kh + TH, kw:kw + W, :].reshape(TH * W, Cin)
            acc = acc + jnp.dot(win, w_ref[kh * 3 + kw],
                                preferred_element_type=jnp.float32)

    # 2x2 max pool, stride 2. acc rows are ordered (h, w) within the tile.
    c = acc.reshape(THp, 2, W, Cpad)
    mh = jnp.maximum(c[:, 0], c[:, 1])                           # (THp, W, Cpad)
    mh2 = mh.reshape(THp, Wp, 2 * Cpad)                          # fold w-parity into lanes
    pooled = jnp.maximum(mh2[:, :, :Cpad], mh2[:, :, Cpad:])     # (THp, Wp, Cpad)
    pooled = pooled.reshape(THp * Wp, Cpad)
    out_ref[0] = pooled

    # Per-tile partial sums for the global (two-pass) BatchNorm statistics.
    s = jnp.sum(pooled, axis=0, keepdims=True)                   # (1, Cpad)
    ss = jnp.sum(pooled * pooled, axis=0, keepdims=True)         # (1, Cpad)
    stats_ref[0] = jnp.concatenate([s, ss], axis=0)              # (2, Cpad)


def _bn_relu_kernel(x_ref, scale_ref, shift_ref, o_ref):
    # Pre-folded BN: y = x * scale + shift, then ReLU (one mul+add per element).
    o_ref[...] = jnp.maximum(x_ref[...] * scale_ref[...] + shift_ref[...], 0.0)


def _pick_thp(Hp, W):
    """Largest THp | Hp giving ~<=512 conv rows per tile and >=2 H-tiles when possible."""
    target = max(1, 256 // max(W, 1))
    target = min(target, max(1, Hp // 2))
    best = 1
    for cand in range(1, Hp + 1):
        if Hp % cand == 0 and cand <= target:
            best = cand
    return best


def base_forward(x_nchw, w, b, gamma, beta, eps=1e-5, thp=None):
    """Pallas implementation of Base.forward. x_nchw: (N, Cin, H, W) float32."""
    del b  # bias cancels exactly through max-pool shift + BN batch-mean subtraction
    N, Cin, H, W = x_nchw.shape
    Cout = w.shape[0]
    assert H % 2 == 0 and W % 2 == 0, "MaxPool2d(2,2) needs even spatial dims"
    Hp, Wp = H // 2, W // 2
    THp = _pick_thp(Hp, W) if thp is None else thp
    assert Hp % THp == 0
    TH = 2 * THp
    nH = Hp // THp
    Cpad = ((Cout + 127) // 128) * 128        # lane-dense channel dimension

    # --- glue: NCHW -> padded NHWC, weight repack (no im2col materialization) ---
    x = jnp.transpose(x_nchw, (0, 2, 3, 1)).astype(jnp.float32)        # (N, H, W, Cin)
    xp = jnp.pad(x, ((0, 0), (1, 1), (1, 1), (0, 0)))                  # (N, H+2, W+2, Cin)
    # (Cout, Cin, 3, 3) -> (kh, kw, Cin, Cout) -> (9, Cin, Cpad), zero-padded channels.
    w9 = jnp.transpose(w, (2, 3, 1, 0)).reshape(9, Cin, Cout).astype(jnp.float32)
    w9 = jnp.pad(w9, ((0, 0), (0, 0), (0, Cpad - Cout)))

    cparams = pltpu.CompilerParams(
        dimension_semantics=("parallel", "parallel"),
        vmem_limit_bytes=48 * 1024 * 1024,
    )

    # --- kernel 1: conv + maxpool + partial BN stats, grid over (N, H-tiles) ----
    kernel1 = functools.partial(_conv_pool_kernel, TH=TH, W=W, Cin=Cin, Cpad=Cpad)
    pooled, stats = pl.pallas_call(
        kernel1,
        grid=(N, nH),
        in_specs=[
            # main slab: padded rows [TH*h, TH*h + TH)
            pl.BlockSpec((1, TH, W + 2, Cin), lambda n, h: (n, h, 0, 0)),
            # 2-row bottom halo: padded rows [TH*(h+1), TH*(h+1) + 2) of the SAME array
            pl.BlockSpec((1, 2, W + 2, Cin), lambda n, h: (n, THp * (h + 1), 0, 0)),
            # full weight tensor resident per step
            pl.BlockSpec((9, Cin, Cpad), lambda n, h: (0, 0, 0)),
        ],
        out_specs=[
            pl.BlockSpec((1, THp * Wp, Cpad), lambda n, h: (n, h, 0)),
            pl.BlockSpec((1, 2, Cpad), lambda n, h: (n * nH + h, 0, 0)),
        ],
        out_shape=[
            jax.ShapeDtypeStruct((N, Hp * Wp, Cpad), jnp.float32),
            jax.ShapeDtypeStruct((N * nH, 2, Cpad), jnp.float32),
        ],
        compiler_params=cparams,
    )(xp, xp, w9)

    # --- tiny JAX reduction: global batch stats -> folded BN scale/shift --------
    M2 = N * Hp * Wp
    ssum = jnp.sum(stats, axis=0)                                  # (2, Cpad)
    mean = ssum[0] / M2
    # E[x^2] - E[x]^2 (biased, matches PyTorch training-mode BN); clamp for safety.
    var = jnp.maximum(ssum[1] / M2 - mean * mean, 0.0)
    gamma_p = jnp.pad(gamma.astype(jnp.float32), (0, Cpad - Cout))
    beta_p = jnp.pad(beta.astype(jnp.float32), (0, Cpad - Cout))
    scale = gamma_p * jax.lax.rsqrt(var + eps)
    shift = beta_p - mean * scale
    scale2 = scale.reshape(1, Cpad)
    shift2 = shift.reshape(1, Cpad)

    # --- kernel 2: apply BN (scale/shift) + ReLU, row-tiled & parallel ----------
    TR = THp * Wp
    pooled2d = pooled.reshape(M2, Cpad)
    out2d = pl.pallas_call(
        _bn_relu_kernel,
        grid=(M2 // TR,),
        in_specs=[
            pl.BlockSpec((TR, Cpad), lambda i: (i, 0)),
            pl.BlockSpec((1, Cpad), lambda i: (0, 0)),
            pl.BlockSpec((1, Cpad), lambda i: (0, 0)),
        ],
        out_specs=pl.BlockSpec((TR, Cpad), lambda i: (i, 0)),
        out_shape=jax.ShapeDtypeStruct((M2, Cpad), jnp.float32),
        compiler_params=pltpu.CompilerParams(
            dimension_semantics=("parallel",),
            vmem_limit_bytes=48 * 1024 * 1024,
        ),
    )(pooled2d, scale2, shift2)

    # --- glue: drop channel padding, back to NCHW -------------------------------
    out = out2d.reshape(N, Hp, Wp, Cpad)[:, :, :, :Cout]
    return jnp.transpose(out, (0, 3, 1, 2))                        # (N, Cout, Hp, Wp)


def ref_forward(x, w, b, gamma, beta, eps=1e-5):
    """Pure-JAX reference matching the PyTorch module (training-mode BN)."""
    y = jax.lax.conv_general_dilated(
        x, w, window_strides=(1, 1), padding=((1, 1), (1, 1)),
        dimension_numbers=("NCHW", "OIHW", "NCHW"))
    y = y + b.reshape(1, -1, 1, 1)
    y = jax.lax.reduce_window(y, -jnp.inf, jax.lax.max,
                              (1, 1, 2, 2), (1, 1, 2, 2), "VALID")
    mean = jnp.mean(y, axis=(0, 2, 3), keepdims=True)
    var = jnp.mean((y - mean) ** 2, axis=(0, 2, 3), keepdims=True)
    y = (y - mean) * jax.lax.rsqrt(var + eps)
    y = y * gamma.reshape(1, -1, 1, 1) + beta.reshape(1, -1, 1, 1)
    return jnp.maximum(y, 0.0)


if __name__ == "__main__":
    # Small shapes consistent with the module: NCHW input.
    N, Cin, Cout, H, W = 2, 4, 8, 16, 16

    key = jax.random.PRNGKey(0)
    kx, kw, kb = jax.random.split(key, 3)
    x = jax.random.normal(kx, (N, Cin, H, W), dtype=jnp.float32)

    # Deterministic parameter init (PyTorch-style uniform bounds for conv).
    fan_in = Cin * 3 * 3
    bound = 1.0 / jnp.sqrt(jnp.float32(fan_in))
    w = jax.random.uniform(kw, (Cout, Cin, 3, 3), jnp.float32, -bound, bound)
    b = jax.random.uniform(kb, (Cout,), jnp.float32, -bound, bound)
    gamma = jnp.ones((Cout,), jnp.float32)   # BatchNorm2d default weight
    beta = jnp.zeros((Cout,), jnp.float32)   # BatchNorm2d default bias

    out = jax.block_until_ready(base_forward(x, w, b, gamma, beta))
    ref = jax.block_until_ready(ref_forward(x, w, b, gamma, beta))

    assert out.shape == (N, Cout, H // 2, W // 2), out.shape
    assert jnp.allclose(out, ref, rtol=2e-4, atol=2e-4), float(
        jnp.max(jnp.abs(out - ref)))
    print("KERNEL_OK")
</pallas_src>

<mosaic_0001>
module attributes {stable_mosaic.version = 11 : i64} {
  func.func @_conv_pool_kernel(%arg0: i32, %arg1: i32, %arg2: memref<1x8x18x4xf32, #tpu.memory_space<vmem>>, %arg3: memref<1x2x18x4xf32, #tpu.memory_space<vmem>>, %arg4: memref<9x4x128xf32, #tpu.memory_space<vmem>>, %arg5: memref<1x32x128xf32, #tpu.memory_space<vmem>>, %arg6: memref<1x2x128xf32, #tpu.memory_space<vmem>>) attributes {dimension_semantics = [#tpu.dimension_semantics<parallel>, #tpu.dimension_semantics<parallel>], iteration_bounds = array<i64: 2, 2>, scalar_prefetch = 0 : i64, scratch_operands = 0 : i64, tpu.core_type = #tpu.core_type<tc>, window_params = [{transform_indices = @transform_0, window_bounds = array<i64: 1, 8, 18, 4>}, {transform_indices = @transform_1, window_bounds = array<i64: 1, 2, 18, 4>}, {pipeline_mode = #tpu.pipeline_mode<synchronous>, transform_indices = @transform_2, window_bounds = array<i64: 9, 4, 128>}, {transform_indices = @transform_3, window_bounds = array<i64: 1, 32, 128>}, {transform_indices = @transform_4, window_bounds = array<i64: 1, 2, 128>}]} {
    %c0 = arith.constant 0 : index
    %c0_0 = arith.constant 0 : index
    %c0_1 = arith.constant 0 : index
    %c0_2 = arith.constant 0 : index
    %0 = vector.load %arg2[%c0, %c0_0, %c0_1, %c0_2] : memref<1x8x18x4xf32, #tpu.memory_space<vmem>>, vector<1x8x18x4xf32>
    %1 = vector.shape_cast %0 : vector<1x8x18x4xf32> to vector<8x18x4xf32>
    %c0_3 = arith.constant 0 : index
    %c0_4 = arith.constant 0 : index
    %c0_5 = arith.constant 0 : index
    %c0_6 = arith.constant 0 : index
    %2 = vector.load %arg3[%c0_3, %c0_4, %c0_5, %c0_6] : memref<1x2x18x4xf32, #tpu.memory_space<vmem>>, vector<1x2x18x4xf32>
    %3 = vector.shape_cast %2 : vector<1x2x18x4xf32> to vector<2x18x4xf32>
    %4 = tpu.concatenate %1, %3 in 0 : vector<8x18x4xf32>, vector<2x18x4xf32> -> vector<10x18x4xf32>
    %cst = arith.constant 0.000000e+00 : f32
    %5 = vector.broadcast %cst : f32 to vector<128x128xf32>
    %6 = vector.extract_strided_slice %4 {offsets = [0, 0, 0], sizes = [8, 16, 4], strides = [1, 1, 1]} : vector<10x18x4xf32> to vector<8x16x4xf32>
    %7 = vector.shape_cast %6 : vector<8x16x4xf32> to vector<128x4xf32>
    %c0_7 = arith.constant 0 : index
    %c0_8 = arith.constant 0 : index
    %c0_9 = arith.constant 0 : index
    %8 = vector.load %arg4[%c0_7, %c0_8, %c0_9] : memref<9x4x128xf32, #tpu.memory_space<vmem>>, vector<1x4x128xf32>
    %9 = vector.shape_cast %8 : vector<1x4x128xf32> to vector<4x128xf32>
    %cst_10 = arith.constant dense<0.000000e+00> : vector<128x128xf32>
    %10 = tpu.matmul %7, %9, %cst_10 {dimension_numbers = #tpu.dot_dimension_numbers<[1], [0], [0], [1], [0, 0, 1, 1], [], []>} : vector<128x4xf32>, vector<4x128xf32>, vector<128x128xf32> -> vector<128x128xf32>
    %11 = arith.addf %5, %10 : vector<128x128xf32>
    %12 = vector.extract_strided_slice %4 {offsets = [0, 1, 0], sizes = [8, 16, 4], strides = [1, 1, 1]} : vector<10x18x4xf32> to vector<8x16x4xf32>
    %13 = vector.shape_cast %12 : vector<8x16x4xf32> to vector<128x4xf32>
    %c1 = arith.constant 1 : index
    %c0_11 = arith.constant 0 : index
    %c0_12 = arith.constant 0 : index
    %14 = vector.load %arg4[%c1, %c0_11, %c0_12] : memref<9x4x128xf32, #tpu.memory_space<vmem>>, vector<1x4x128xf32>
    %15 = vector.shape_cast %14 : vector<1x4x128xf32> to vector<4x128xf32>
    %cst_13 = arith.constant dense<0.000000e+00> : vector<128x128xf32>
    %16 = tpu.matmul %13, %15, %cst_13 {dimension_numbers = #tpu.dot_dimension_numbers<[1], [0], [0], [1], [0, 0, 1, 1], [], []>} : vector<128x4xf32>, vector<4x128xf32>, vector<128x128xf32> -> vector<128x128xf32>
    %17 = arith.addf %11, %16 : vector<128x128xf32>
    %18 = vector.extract_strided_slice %4 {offsets = [0, 2, 0], sizes = [8, 16, 4], strides = [1, 1, 1]} : vector<10x18x4xf32> to vector<8x16x4xf32>
    %19 = vector.shape_cast %18 : vector<8x16x4xf32> to vector<128x4xf32>
    %c2 = arith.constant 2 : index
    %c0_14 = arith.constant 0 : index
    %c0_15 = arith.constant 0 : index
    %20 = vector.load %arg4[%c2, %c0_14, %c0_15] : memref<9x4x128xf32, #tpu.memory_space<vmem>>, vector<1x4x128xf32>
    %21 = vector.shape_cast %20 : vector<1x4x128xf32> to vector<4x128xf32>
    %cst_16 = arith.constant dense<0.000000e+00> : vector<128x128xf32>
    %22 = tpu.matmul %19, %21, %cst_16 {dimension_numbers = #tpu.dot_dimension_numbers<[1], [0], [0], [1], [0, 0, 1, 1], [], []>} : vector<128x4xf32>, vector<4x128xf32>, vector<128x128xf32> -> vector<128x128xf32>
    %23 = arith.addf %17, %22 : vector<128x128xf32>
    %24 = vector.extract_strided_slice %4 {offsets = [1, 0, 0], sizes = [8, 16, 4], strides = [1, 1, 1]} : vector<10x18x4xf32> to vector<8x16x4xf32>
    %25 = vector.shape_cast %24 : vector<8x16x4xf32> to vector<128x4xf32>
    %c3 = arith.constant 3 : index
    %c0_17 = arith.constant 0 : index
    %c0_18 = arith.constant 0 : index
    %26 = vector.load %arg4[%c3, %c0_17, %c0_18] : memref<9x4x128xf32, #tpu.memory_space<vmem>>, vector<1x4x128xf32>
    %27 = vector.shape_cast %26 : vector<1x4x128xf32> to vector<4x128xf32>
    %cst_19 = arith.constant dense<0.000000e+00> : vector<128x128xf32>
    %28 = tpu.matmul %25, %27, %cst_19 {dimension_numbers = #tpu.dot_dimension_numbers<[1], [0], [0], [1], [0, 0, 1, 1], [], []>} : vector<128x4xf32>, vector<4x128xf32>, vector<128x128xf32> -> vector<128x128xf32>
    %29 = arith.addf %23, %28 : vector<128x128xf32>
    %30 = vector.extract_strided_slice %4 {offsets = [1, 1, 0], sizes = [8, 16, 4], strides = [1, 1, 1]} : vector<10x18x4xf32> to vector<8x16x4xf32>
    %31 = vector.shape_cast %30 : vector<8x16x4xf32> to vector<128x4xf32>
    %c4 = arith.constant 4 : index
    %c0_20 = arith.constant 0 : index
    %c0_21 = arith.constant 0 : index
    %32 = vector.load %arg4[%c4, %c0_20, %c0_21] : memref<9x4x128xf32, #tpu.memory_space<vmem>>, vector<1x4x128xf32>
    %33 = vector.shape_cast %32 : vector<1x4x128xf32> to vector<4x128xf32>
    %cst_22 = arith.constant dense<0.000000e+00> : vector<128x128xf32>
    %34 = tpu.matmul %31, %33, %cst_22 {dimension_numbers = #tpu.dot_dimension_numbers<[1], [0], [0], [1], [0, 0, 1, 1], [], []>} : vector<128x4xf32>, vector<4x128xf32>, vector<128x128xf32> -> vector<128x128xf32>
    %35 = arith.addf %29, %34 : vector<128x128xf32>
    %36 = vector.extract_strided_slice %4 {offsets = [1, 2, 0], sizes = [8, 16, 4], strides = [1, 1, 1]} : vector<10x18x4xf32> to vector<8x16x4xf32>
    %37 = vector.shape_cast %36 : vector<8x16x4xf32> to vector<128x4xf32>
    %c5 = arith.constant 5 : index
    %c0_23 = arith.constant 0 : index
    %c0_24 = arith.constant 0 : index
    %38 = vector.load %arg4[%c5, %c0_23, %c0_24] : memref<9x4x128xf32, #tpu.memory_space<vmem>>, vector<1x4x128xf32>
    %39 = vector.shape_cast %38 : vector<1x4x128xf32> to vector<4x128xf32>
    %cst_25 = arith.constant dense<0.000000e+00> : vector<128x128xf32>
    %40 = tpu.matmul %37, %39, %cst_25 {dimension_numbers = #tpu.dot_dimension_numbers<[1], [0], [0], [1], [0, 0, 1, 1], [], []>} : vector<128x4xf32>, vector<4x128xf32>, vector<128x128xf32> -> vector<128x128xf32>
    %41 = arith.addf %35, %40 : vector<128x128xf32>
    %42 = vector.extract_strided_slice %4 {offsets = [2, 0, 0], sizes = [8, 16, 4], strides = [1, 1, 1]} : vector<10x18x4xf32> to vector<8x16x4xf32>
    %43 = vector.shape_cast %42 : vector<8x16x4xf32> to vector<128x4xf32>
    %c6 = arith.constant 6 : index
    %c0_26 = arith.constant 0 : index
    %c0_27 = arith.constant 0 : index
    %44 = vector.load %arg4[%c6, %c0_26, %c0_27] : memref<9x4x128xf32, #tpu.memory_space<vmem>>, vector<1x4x128xf32>
    %45 = vector.shape_cast %44 : vector<1x4x128xf32> to vector<4x128xf32>
    %cst_28 = arith.constant dense<0.000000e+00> : vector<128x128xf32>
    %46 = tpu.matmul %43, %45, %cst_28 {dimension_numbers = #tpu.dot_dimension_numbers<[1], [0], [0], [1], [0, 0, 1, 1], [], []>} : vector<128x4xf32>, vector<4x128xf32>, vector<128x128xf32> -> vector<128x128xf32>
    %47 = arith.addf %41, %46 : vector<128x128xf32>
    %48 = vector.extract_strided_slice %4 {offsets = [2, 1, 0], sizes = [8, 16, 4], strides = [1, 1, 1]} : vector<10x18x4xf32> to vector<8x16x4xf32>
    %49 = vector.shape_cast %48 : vector<8x16x4xf32> to vector<128x4xf32>
    %c7 = arith.constant 7 : index
    %c0_29 = arith.constant 0 : index
    %c0_30 = arith.constant 0 : index
    %50 = vector.load %arg4[%c7, %c0_29, %c0_30] : memref<9x4x128xf32, #tpu.memory_space<vmem>>, vector<1x4x128xf32>
    %51 = vector.shape_cast %50 : vector<1x4x128xf32> to vector<4x128xf32>
    %cst_31 = arith.constant dense<0.000000e+00> : vector<128x128xf32>
    %52 = tpu.matmul %49, %51, %cst_31 {dimension_numbers = #tpu.dot_dimension_numbers<[1], [0], [0], [1], [0, 0, 1, 1], [], []>} : vector<128x4xf32>, vector<4x128xf32>, vector<128x128xf32> -> vector<128x128xf32>
    %53 = arith.addf %47, %52 : vector<128x128xf32>
    %54 = vector.extract_strided_slice %4 {offsets = [2, 2, 0], sizes = [8, 16, 4], strides = [1, 1, 1]} : vector<10x18x4xf32> to vector<8x16x4xf32>
    %55 = vector.shape_cast %54 : vector<8x16x4xf32> to vector<128x4xf32>
    %c8 = arith.constant 8 : index
    %c0_32 = arith.constant 0 : index
    %c0_33 = arith.constant 0 : index
    %56 = vector.load %arg4[%c8, %c0_32, %c0_33] : memref<9x4x128xf32, #tpu.memory_space<vmem>>, vector<1x4x128xf32>
    %57 = vector.shape_cast %56 : vector<1x4x128xf32> to vector<4x128xf32>
    %cst_34 = arith.constant dense<0.000000e+00> : vector<128x128xf32>
    %58 = tpu.matmul %55, %57, %cst_34 {dimension_numbers = #tpu.dot_dimension_numbers<[1], [0], [0], [1], [0, 0, 1, 1], [], []>} : vector<128x4xf32>, vector<4x128xf32>, vector<128x128xf32> -> vector<128x128xf32>
    %59 = arith.addf %53, %58 : vector<128x128xf32>
    %60 = vector.shape_cast %59 : vector<128x128xf32> to vector<4x2x16x128xf32>
    %61 = vector.extract_strided_slice %60 {offsets = [0, 0, 0, 0], sizes = [4, 1, 16, 128], strides = [1, 1, 1, 1]} : vector<4x2x16x128xf32> to vector<4x1x16x128xf32>
    %62 = vector.shape_cast %61 : vector<4x1x16x128xf32> to vector<4x16x128xf32>
    %63 = vector.extract_strided_slice %60 {offsets = [0, 1, 0, 0], sizes = [4, 1, 16, 128], strides = [1, 1, 1, 1]} : vector<4x2x16x128xf32> to vector<4x1x16x128xf32>
    %64 = vector.shape_cast %63 : vector<4x1x16x128xf32> to vector<4x16x128xf32>
    %65 = arith.maximumf %62, %64 : vector<4x16x128xf32>
    %66 = vector.shape_cast %65 : vector<4x16x128xf32> to vector<4x8x256xf32>
    %67 = vector.extract_strided_slice %66 {offsets = [0, 0, 0], sizes = [4, 8, 128], strides = [1, 1, 1]} : vector<4x8x256xf32> to vector<4x8x128xf32>
    %68 = vector.extract_strided_slice %66 {offsets = [0, 0, 128], sizes = [4, 8, 128], strides = [1, 1, 1]} : vector<4x8x256xf32> to vector<4x8x128xf32>
    %69 = arith.maximumf %67, %68 : vector<4x8x128xf32>
    %70 = vector.shape_cast %69 : vector<4x8x128xf32> to vector<32x128xf32>
    %c0_35 = arith.constant 0 : index
    %c0_36 = arith.constant 0 : index
    %c0_37 = arith.constant 0 : index
    %71 = vector.load %arg5[%c0_35, %c0_36, %c0_37] : memref<1x32x128xf32, #tpu.memory_space<vmem>>, vector<1x32x128xf32>
    %72 = vector.shape_cast %71 : vector<1x32x128xf32> to vector<32x128xf32>
    %73 = vector.shape_cast %70 : vector<32x128xf32> to vector<1x32x128xf32>
    tpu.vector_store %arg5[%c0_35, %c0_36, %c0_37], %73 {strides = array<i32>} : memref<1x32x128xf32, #tpu.memory_space<vmem>>, vector<1x32x128xf32>,
    %cst_38 = arith.constant dense<0.000000e+00> : vector<128xf32>
    %74 = vector.multi_reduction <add>, %70, %cst_38 [0] : vector<32x128xf32> to vector<128xf32>
    %75 = vector.shape_cast %74 : vector<128xf32> to vector<1x128xf32>
    %76 = arith.mulf %70, %70 : vector<32x128xf32>
    %cst_39 = arith.constant dense<0.000000e+00> : vector<128xf32>
    %77 = vector.multi_reduction <add>, %76, %cst_39 [0] : vector<32x128xf32> to vector<128xf32>
    %78 = vector.shape_cast %77 : vector<128xf32> to vector<1x128xf32>
    %79 = tpu.concatenate %75, %78 in 0 : vector<1x128xf32>, vector<1x128xf32> -> vector<2x128xf32>
    %c0_40 = arith.constant 0 : index
    %c0_41 = arith.constant 0 : index
    %c0_42 = arith.constant 0 : index
    %80 = vector.load %arg6[%c0_40, %c0_41, %c0_42] : memref<1x2x128xf32, #tpu.memory_space<vmem>>, vector<1x2x128xf32>
    %81 = vector.shape_cast %80 : vector<1x2x128xf32> to vector<2x128xf32>
    %82 = vector.shape_cast %79 : vector<2x128xf32> to vector<1x2x128xf32>
    tpu.vector_store %arg6[%c0_40, %c0_41, %c0_42], %82 {strides = array<i32>} : memref<1x2x128xf32, #tpu.memory_space<vmem>>, vector<1x2x128xf32>,
    return
  }
  func.func @transform_0(%arg0: i32, %arg1: i32) -> (i32, i32, i32, i32) {
    %c0_i32 = arith.constant 0 : i32
    %c0_i32_0 = arith.constant 0 : i32
    %c0_i32_1 = arith.constant 0 : i32
    return %arg0, %arg1, %c0_i32, %c0_i32_0 : i32, i32, i32, i32
  }
  func.func @transform_1(%arg0: i32, %arg1: i32) -> (i32, i32, i32, i32) {
    %c1_i32 = arith.constant 1 : i32
    %0 = arith.addi %arg1, %c1_i32 : i32
    %c4_i32 = arith.constant 4 : i32
    %1 = arith.muli %c4_i32, %0 : i32
    %c0_i32 = arith.constant 0 : i32
    %c0_i32_0 = arith.constant 0 : i32
    %c0_i32_1 = arith.constant 0 : i32
    return %arg0, %1, %c0_i32, %c0_i32_0 : i32, i32, i32, i32
  }
  func.func @transform_2(%arg0: i32, %arg1: i32) -> (i32, i32, i32) {
    %c0_i32 = arith.constant 0 : i32
    %c0_i32_0 = arith.constant 0 : i32
    %c0_i32_1 = arith.constant 0 : i32
    %c0_i32_2 = arith.constant 0 : i32
    return %c0_i32, %c0_i32_0, %c0_i32_1 : i32, i32, i32
  }
  func.func @transform_3(%arg0: i32, %arg1: i32) -> (i32, i32, i32) {
    %c0_i32 = arith.constant 0 : i32
    %c0_i32_0 = arith.constant 0 : i32
    return %arg0, %arg1, %c0_i32 : i32, i32, i32
  }
  func.func @transform_4(%arg0: i32, %arg1: i32) -> (i32, i32, i32) {
    %c2_i32 = arith.constant 2 : i32
    %0 = arith.muli %arg0, %c2_i32 : i32
    %1 = arith.addi %0, %arg1 : i32
    %c0_i32 = arith.constant 0 : i32
    %c0_i32_0 = arith.constant 0 : i32
    %c0_i32_1 = arith.constant 0 : i32
    return %1, %c0_i32, %c0_i32_0 : i32, i32, i32
  }
}

</mosaic_0001>

<bundles_post_ra>
// kernel: tpu_custom_call.1
= control target key start
LH: loop header
LB: loop body
LE: loop exit
PB: predicated region body
PF: predicated region fallthrough
CT: control target
= control target key end

     0   :  { %s4285_s0 = inlined_call_operand.vmem [shape: f32[2,18,18,4], index: 0, kind: input, shape index: {}]   ;;  %s4286_s1 = inlined_call_operand.vmem [shape: f32[2,18,18,4], index: 1, kind: input, shape index: {}]   ;;  %s4287_s2 = inlined_call_operand.vmem [shape: f32[9,4,128], index: 2, kind: input, shape index: {}]   ;;  %s4288_s3 = inlined_call_operand.hbm [shape: f32[2,64,128], index: 3, kind: output, shape index: {0}]   ;;  %s4289_s4 = inlined_call_operand.hbm [shape: f32[4,2,128], index: 4, kind: output, shape index: {1}]  }
   0x1   :  { %4295 = sst [smem:[#allocation11_spill]] %s4288_s3 }
   0x2   :  { %4296 = sst [smem:[#allocation12_spill]] %s4289_s4 }
   0x3   :  { %10 = vsyncpa [#allocation3], 0 }
   0x4   :  { %12 = vsyncpa [#allocation3 + $0x1], 0 }
   0x5   :  { %13 = vsyncpa [#allocation5], 0 }
   0x6   :  { %15 = vsyncpa [#allocation5 + $0x1], 0  ;;  %s3407_s15 = smov 0   ;;  %s3409_s16 = smov 0  }
   0x7   :  { %s3411_s17 = smov 0   ;;  %s3413_s18 = smov 0  }
   0x8   :  { %s3415_s19 = smov 0   ;;  %s3417_s20 = smov 0  }
   0x9   :  { %s3419_s21 = smov 0   ;;  %s3421_s22 = smov 0  }
   0xa   :  { %s3423_s23 = smov 0   ;;  %s3425_s24 = smov 0  }
   0xb   :  { %s3427_s25 = smov 0  }
   0xc LB: > { %4297 = sst [smem:[#allocation8_spill]] %s3347_s18  ;;  %s2407_s26 = sadd.s32 4294967295, %s3375_s25   ;;  %s3375_s25 = sphi %s3427_s25, %s21_s25   ;;  %s3371_s24 = sphi %s3425_s24, %s4322_s24   ;;  %s3367_s23 = sphi %s3423_s23, %s4321_s23   ;;  %s3363_s22 = sphi %s3421_s22, %s4320_s22   ;;  %s3359_s21 = sphi %s3419_s21, %s4319_s21   ;;  %s3355_s20 = sphi %s3417_s20, %s4318_s20   ;;  %s3351_s19 = sphi %s3415_s19, %s4317_s19   ;;  %s3347_s18 = sphi %s3413_s18, %s4316_s18   ;;  %s3343_s17 = sphi %s3411_s17, %s4315_s17   ;;  %s3339_s16 = sphi %s3409_s16, %s4314_s16   ;;  %s3335_s15 = sphi %s3407_s15, %s4313_s15  }
   0xd   : > { %s2408_s27 = sadd.s32 4294967294, %s3375_s25   ;;  %s30_s28 = sadd.s32 1, %s3367_s23 }
   0xe   : > { %s33_s29 = sadd.s32 1, %s3371_s24  ;;  %p31_p0 = scmp.ge.s32.totalorder %s30_s28, 2 }
   0xf   : > { %s123_s30 = sadd.s32 1, %s3355_s20  ;;  %p133_p1 = scmp.ne.s32.totalorder %s3355_s20, %s3351_s19 }
  0x10   : > { %p3469_p2 = scmp.eq.s32.totalorder %s2407_s26, 3  ;;  %s4324_s28 = smov (%p31_p0, %s30_s28), 0 }
  0x11   : > { %4299 = sst [smem:[#allocation9_spill]] %s4324_s28  ;;  %s4326_s29 = smov (!%p31_p0, %s33_s29), %s3371_s24 }
  0x12   : > { %s119_s6 = ssub.s32 %s3367_s23, %s4324_s28  ;;  %p3480_p3 = por %p3469_p2, %p133_p1 }
  0x13   : > { %p35_p4 = scmp.ge.s32.totalorder %s4326_s29, 2  ;;  %p139_p5 = scmp.ne.s32.totalorder %s3351_s19, %s3347_s18 }
  0x14   : > { %p3486_p6 = scmp.eq.s32.totalorder %s2408_s27, 3  ;;  %s2411_s9 = sshll.u32 %s3371_s24, 1 }
  0x15   : > { %s4328_s29 = smov (%p35_p4, %s4326_s29), 0  ;;  %s147_s11 = sadd.s32 %s3367_s23, %s2411_s9 }
  0x16   : > { %4302 = sst [smem:[#allocation10_spill]] %s4328_s29  ;;  %p3495_p7 = por %p3486_p6, %p139_p5 }
  0x17   : > { %s118_s12 = ssub.s32 %s3371_s24, %s4328_s29  ;;  %s2412_s13 = sshll.u32 %s4328_s29, 1 }
  0x18   : > { %s120_s14 = sor.u32 %s119_s6, %s118_s12  ;;  %s149_s26 = sadd.s32 %s2412_s13, %s4324_s28 }
  0x19   : > { %p121_p8 = scmp.eq.s32.totalorder %s120_s14, 0  ;;  %s150_s27 = ssub.s32 %s147_s11, %s149_s26 }
  0x1a   : > { %p151_p9 = scmp.eq.s32.totalorder %s150_s27, 0  ;;  %s153_s18 = sadd.s32 1, %s3343_s17 }
  0x1b   : > { %s3506_s4 = scalar_select %p121_p8, %s3355_s20, %s123_s30  }
  0x1c   : > { %s3509_s3 = scalar_select %p151_p9, %s3343_s17, %s153_s18  }
  0x1d   : > { %p163_p10 = scmp.ne.s32.totalorder %s3343_s17, %s3339_s16  ;;  %p169_p11 = scmp.ne.s32.totalorder %s3339_s16, %s3335_s15 }
  0x1e   : > { %p2415_p12 = scmp.ge.s32.totalorder %s3375_s25, 1  ;;  %p233_p13 = scmp.lt.s32.totalorder %s3375_s25, 5 }
  0x1f   : > { %p3519_p0 = por %p163_p10, %p3469_p2  ;;  %p3525_p1 = por %p169_p11, %p3486_p6 }
  0x20   : > { %p234_p4 = pnand %p2415_p12, %p233_p13 }
  0x21   : > { %v2423_v0 = vld [vmem:[%s4287_s2 + $0x4] sm:$0xf] (!%p234_p4)  ;;  %vm456_vm0 = vcmask (!%p234_p4), 1043456   ;;  %v3535_v1 = vld [vmem:[%s4287_s2 + $0x10] sm:$0xf] (!%p234_p4)  ;;  %s3538_s8 = sshll.u32 (!%p234_p4), %s3359_s21, 3 }
  0x22   : > { %237 = sbr.rel (%p234_p4) target bundleno = 462 (0x1ce), region = 32  ;;  %2755 = vmatprep.subr.msk.mxu1 (!%p234_p4), %vm456_vm0, %v2423_v0  ;;  %2859 = vmatprep.subr.msk.mxu0 (!%p234_p4), %vm456_vm0, %v3535_v1  ;;  %p292_p2 = scmp.lt.s32.totalorder (!%p234_p4), %s3363_s22, 1  ;;  %v355_v2 = vld [vmem:[%s4287_s2] sm:$0xf] (!%p234_p4)  ;;  %v2512_v3 = vld [vmem:[%s4287_s2 + $0x14] sm:$0xf] (!%p234_p4) }
  0x23   : > { %p294_p5 = scmp.lt.s32.totalorder (!%p234_p4), %s3538_s8, 17  ;;  %2756 = vmatpush3.msk.msra.mxu1 (!%p234_p4), %vm456_vm0, %v2423_v0  ;;  %2860 = vmatpush3.msk.msra.mxu0 (!%p234_p4), %vm456_vm0, %v3535_v1  ;;  %s2601_s14 = sadd.s32 (!%p234_p4), 8, %s3538_s8  ;;  %vm380_vm1 = vcmask (!%p234_p4), 1046528   ;;  %vm423_vm2 = vcmask (!%p234_p4), 31744   ;;  %v3638_v33 = vld [vmem:[%s4287_s2 + $0x18] sm:$0xf] (!%p234_p4) }
  0x24   : > { %2781 = vmatprep.subr.msk.mxu1 (!%p234_p4), %vm456_vm0, %v355_v2  ;;  %2885 = vmatprep.subr.msk.mxu0 (!%p234_p4), %vm456_vm0, %v2512_v3  ;;  %p3597_p6 = scmp.lt.s32.totalorder (!%p234_p4), %s2601_s14, 17  ;;  %v3648_v35 = vld [vmem:[%s4287_s2 + $0x8] sm:$0xf] (!%p234_p4)  ;;  %vm785_vm3 = vcmask (!%p234_p4), 1045504   ;;  %s2587_s13 = sshll.u32 (!%p234_p4), %s3363_s22, 3 }
  0x29   : > { %s3555_s27 = scalar_select %p292_p2, %s3363_s22, 1 }
  0x2a   : > { %s295_s30 = scalar_select %p294_p5, %s3538_s8, 17 }
  0x2b   : > { %s3120_s11 = smul.u32 54, %s3555_s27  ;;  %s4330_s14 = smov (!%p3597_p6, %s2601_s14), 17 }
  0x2c   : > { %s3119_s18 = smul.u32 3, %s295_s30 }
  0x2d   : > { %s3121_s8 = smul.u32 3, %s4330_s14 }
  0x2e   : > { %s298_s5 = sadd.s32 %s3120_s11, %s3119_s18  ;;  %s4307_s18 = sld [smem:[#allocation11_spill]] }
  0x2f   : > { %s2419_s12 = sshll.u32 %s298_s5, 3 }
  0x30   : > { %s3566_s28 = scalar_lea.vmem %s4285_s0, %s2419_s12  ;;  %s3710_s12 = sadd.s32 %s3121_s8, %s3120_s11 }
  0x31   : > { %v3570_v4 = vld [vmem:[%s3566_s28] sm:$0xff]  ;;  %v3573_v5 = vld [vmem:[%s3566_s28 + $0x8] sm:$0xff]  ;;  %v3576_v6 = vld [vmem:[%s3566_s28 + $0x18] sm:$0xff]  ;;  %s2422_s27 = sshll.u32 %s3710_s12, 3  ;;  %s276_s8 = sand.u32 1, %s3351_s19  }
  0x32   : > { %v381_v7 = vrot.slane %v3570_v4, 1  ;;  %v382_v8 = vrot.slane %v3573_v5, 1  ;;  %v3581_v9 = vld [vmem:[%s3566_s28 + $0x20] sm:$0xff]  ;;  %v386_v10 = vrot.slane %v3576_v6, 1  ;;  %v3585_v11 = vld [vmem:[%s3566_s28 + $0x10] sm:$0x3]  ;;  %s3767_s14 = scalar_lea.vmem %s4286_s1, %s2422_s27 }
  0x33   : > { %v387_v12 = vrot.slane %v3581_v9, 1  ;;  %v384_v13 = vrot.slane %v3585_v11, 1  ;;  %v3590_v14 = vld [vmem:[%s3566_s28 + $0x28] sm:$0x3]  ;;  %v3593_v15 = vld [vmem:[%s3566_s28 + $0x30] sm:$0xff]  ;;  %v3604_v18 = vld [vmem:[%s3566_s28 + $0x38] sm:$0xff] }
  0x34   : > { %v383_v16 = vsel %vm380_vm1, %v381_v7, %v382_v8  ;;  %v389_v17 = vrot.slane %v3590_v14, 1  ;;  %v391_v19 = vrot.slane %v3593_v15, 1  ;;  %v3608_v20 = vld [vmem:[%s3566_s28 + $0x40] sm:$0x3]  ;;  %v392_v23 = vrot.slane %v3604_v18, 1  ;;  %v3616_v25 = vld [vmem:[%s3566_s28 + $0x48] sm:$0xff]  ;;  %s4308_s5 = smov %s4307_s18 }
  0x35   : > { %2757 = vmatprep.mubr.msk.f32.mxu1 %vm423_vm2, %v383_v16  ;;  %v388_v21 = vsel %vm380_vm1, %v386_v10, %v387_v12  ;;  %v385_v22 = vsel %vm380_vm1, %v382_v8, %v384_v13  ;;  %v394_v24 = vrot.slane %v3608_v20, 1  ;;  %v3619_v26 = vld [vmem:[%s3566_s28 + $0x50] sm:$0xff]  ;;  %v3622_v27 = vld [vmem:[%s3566_s28 + $0x58] sm:$0x3]  ;;  %v396_v29 = vrot.slane %v3616_v25, 1  ;;  %v3630_v31 = vld [vmem:[%s3566_s28 + $0x60] sm:$0xff] }
  0x36   : > { %2861 = vmatprep.mubr.msk.f32.mxu0 %vm423_vm2, %v388_v21  ;;  %2758 = vmatmul.mubr.msk.f32.vlgmr.msra.gmra.mrb[0].mxu1 %vm423_vm2, %v385_v22  ;;  %v390_v28 = vsel %vm380_vm1, %v387_v12, %v389_v17  ;;  %v397_v30 = vrot.slane %v3619_v26, 1  ;;  %v3633_v32 = vld [vmem:[%s3566_s28 + $0x68] sm:$0xff]  ;;  %v3643_v34 = vsel %vm380_vm1, %v391_v19, %v392_v23  ;;  %v399_v37 = vrot.slane %v3622_v27, 1  ;;  %v3670_v41 = vld [vmem:[%s3566_s28 + $0x70] sm:$0x3]  ;;  %v3694_v47 = vld [vmem:[%s3566_s28 + $0x78] sm:$0xff] }
  0x37   : > { %2782 = vmatpush3.msk.msra.mxu1 %vm456_vm0, %v355_v2  ;;  %2862 = vmatmul.mubr.msk.f32.vlgmr.msra.gmra.mrb[0].mxu0 %vm423_vm2, %v390_v28  ;;  %v3659_v36 = vsel %vm380_vm1, %v392_v23, %v394_v24  ;;  %v401_v39 = vrot.slane %v3630_v31, 1  ;;  %v402_v40 = vrot.slane %v3633_v32, 1  ;;  %v404_v43 = vrot.slane %v3670_v41, 1  ;;  %v3697_v48 = vld [vmem:[%s3566_s28 + $0x80] sm:$0xff]  ;;  %v3706_v49 = vld [vmem:[%s3566_s28 + $0x88] sm:$0x3] }
  0x38   : > { %2886 = vmatpush3.msk.msra.mxu0 %vm456_vm0, %v2512_v3  ;;  %2760 = vmatprep.mubr.msk.f32.mxu1 %vm423_vm2, %v388_v21  ;;  %v3665_v38 = vsel %vm380_vm1, %v396_v29, %v397_v30  ;;  %v3685_v42 = vsel %vm380_vm1, %v397_v30, %v399_v37  ;;  %v791_v45 = vrot.slane %v3576_v6, 2  ;;  %v792_v46 = vrot.slane %v3581_v9, 2  ;;  %v3721_v54 = vld [vmem:[%s3566_s28 + $0x90] sm:$0xff]  ;;  %v3724_v55 = vld [vmem:[%s3566_s28 + $0x98] sm:$0xff]  ;;  %v3751_v2 = vld [vmem:[%s3566_s28 + $0xa0] sm:$0x3] }
  0x39   : > { %2864 = vmatprep.mubr.msk.f32.mxu0 %vm423_vm2, %v3643_v34  ;;  %2911 = vmatprep.subr.msk.mxu0 %vm456_vm0, %v3638_v33  ;;  %v3689_v44 = vsel %vm380_vm1, %v401_v39, %v402_v40  ;;  %v794_v50 = vrot.slane %v3590_v14, 2  ;;  %v3716_v51 = vsel %vm380_vm1, %v402_v40, %v404_v43  ;;  %v406_v52 = vrot.slane %v3694_v47, 1  ;;  %v3759_v10 = vld [vmem:[%s3566_s28 + $0xa8] sm:$0xff]  ;;  %v3762_v12 = vld [vmem:[%s3566_s28 + $0xb0] sm:$0xff]  ;;  %v3777_v14 = vld [vmem:[%s4287_s2 + $0x1c] sm:$0xf] }
  0x3a   : > { %2761 = vmatmul.mubr.msk.f32.gmra.mrb[2].mxu1 %vm423_vm2, %v390_v28  ;;  %2807 = vmatprep.subr.msk.mxu1 %vm456_vm0, %v3648_v35  ;;  %v407_v53 = vrot.slane %v3697_v48, 1  ;;  %v3727_v56 = vsel %vm785_vm3, %v791_v45, %v792_v46  ;;  %v796_v57 = vrot.slane %v3593_v15, 2  ;;  %v797_v58 = vrot.slane %v3604_v18, 2  ;;  %v3780_v16 = vld [vmem:[%s3767_s14 + $0x20] sm:$0xff]  ;;  %v354_v17 = vld [vmem:[%s3767_s14 + $0x28] sm:$0x3] }
  0x3b   : > { %2865 = vmatmul.mubr.msk.f32.gmra.mrb[2].mxu0 %vm423_vm2, %v3659_v36  ;;  %2763 = vmatprep.mubr.msk.f32.mxu1 %vm423_vm2, %v3643_v34  ;;  %v409_v59 = vrot.slane %v3706_v49, 1  ;;  %v799_v60 = vrot.slane %v3608_v20, 2  ;;  %v411_v61 = vrot.slane %v3721_v54, 1  ;;  %v412_v62 = vrot.slane %v3724_v55, 1  ;;  %v348_v29 = vld [vmem:[%s3566_s28 + $0xb8] sm:$0x3] }
  0x3c   : > { %2867 = vmatprep.mubr.msk.f32.mxu0 %vm423_vm2, %v3665_v38  ;;  %v3745_v63 = vsel %vm785_vm3, %v792_v46, %v794_v50  ;;  %v3748_v0 = vsel %vm380_vm1, %v406_v52, %v407_v53  ;;  %v3754_v3 = vsel %vm785_vm3, %v796_v57, %v797_v58  ;;  %v801_v7 = vrot.slane %v3616_v25, 2  ;;  %s2416_s12 = sshll.u32 %s276_s8, 5  ;;  %s2586_s11 = sshll.u32 %s3359_s21, 2 }
  0x3d   : > { %v802_v8 = vrot.slane %v3619_v26, 2  ;;  %v3772_v13 = vsel %vm380_vm1, %v407_v53, %v409_v59  ;;  %v3788_v19 = vsel %vm785_vm3, %v797_v58, %v799_v60  ;;  %v3791_v20 = vsel %vm380_vm1, %v411_v61, %v412_v62  ;;  %s4167_s27 = scalar_lea.vmem [#allocation2], %s2416_s12 }
  0x3e   : > { %2764 = vmatmul.mubr.msk.f32.gmra.mrb[4].mxu1 %vm423_vm2, %v3659_v36  ;;  %v414_v21 = vrot.slane %v3751_v2, 1  ;;  %v1721_v22 = vrot.slane %v3780_v16, 1  ;;  %v804_v23 = vrot.slane %v3622_v27, 2  ;;  %v416_v24 = vrot.slane %v3759_v10, 1  ;;  %s2252_s26 = sshll.u32 %s4167_s27, 4  ;;  %s4185_s26 = int_to_ptr.vmem [resolvable:$true] %s2252_s26 }
  0x3f   : > { %2868 = vmatmul.mubr.msk.f32.gmra.mrb[4].mxu0 %vm423_vm2, %v3685_v42  ;;  %2766 = vmatprep.mubr.msk.f32.mxu1 %vm423_vm2, %v3665_v38  ;;  %v417_v28 = vrot.slane %v3762_v12, 1  ;;  %v1896_v30 = vrot.slane %v3780_v16, 2  ;;  %v3805_v37 = vsel %vm785_vm3, %v801_v7, %v802_v8  ;;  %v806_v39 = vrot.slane %v3630_v31, 2 }
  0x40   : > { %2870 = vmatprep.mubr.msk.f32.mxu0 %vm423_vm2, %v3689_v44  ;;  %v807_v40 = vrot.slane %v3633_v32, 2  ;;  %v1898_v27 = vrot.slane %v354_v17, 2  ;;  %v3818_v43 = vsel %vm380_vm1, %v412_v62, %v414_v21  ;;  %v419_v45 = vrot.slane %v348_v29, 1 }
  0x41   : > { %v3828_v50 = vsel %vm785_vm3, %v802_v8, %v804_v23  ;;  %v3831_v52 = vsel %vm380_vm1, %v416_v24, %v417_v28  ;;  %v809_v53 = vrot.slane %v3670_v41, 2  ;;  %v811_v59 = vrot.slane %v3694_v47, 2 }
  0x42   : > { %2767 = vmatmul.mubr.msk.f32.gmra.mrb[6].mxu1 %vm423_vm2, %v3685_v42  ;;  %v3837_v57 = vsel %vm785_vm3, %v1896_v30, %v1898_v27  ;;  %v3840_v58 = vsel %vm785_vm3, %v806_v39, %v807_v40  ;;  %v812_v60 = vrot.slane %v3697_v48, 2  ;;  %v3851_v41 = vsel %vm380_vm1, %v417_v28, %v419_v45  ;;  %v3884_v39 = vld [vmem:[%s3767_s14] sm:$0xff] }
  0x43   : > { %2871 = vmatmul.mubr.msk.f32.gmra.mrb[6].mxu0 %vm423_vm2, %v3716_v51  ;;  %2769 = vmatprep.mubr.msk.f32.mxu1 %vm423_vm2, %v3689_v44  ;;  %v3856_v61 = vsel %vm785_vm3, %v807_v40, %v809_v53  ;;  %v814_v62 = vrot.slane %v3706_v49, 2  ;;  %v816_v8 = vrot.slane %v3721_v54, 2  ;;  %v819_v21 = vrot.slane %v3751_v2, 2  ;;  %v3887_v40 = vld [vmem:[%s3767_s14 + $0x8] sm:$0xff] }
  0x44   : > { %2887 = vmatprep.mubr.msk.f32.mxu0 %vm423_vm2, %v3727_v56  ;;  %v3860_v7 = vsel %vm785_vm3, %v811_v59, %v812_v60  ;;  %v821_v24 = vrot.slane %v3759_v10, 2  ;;  %v822_v28 = vrot.slane %v3762_v12, 2  ;;  %v824_v27 = vrot.slane %v348_v29, 2  ;;  %v3909_v59 = vld [vmem:[%s3767_s14 + $0x10] sm:$0x3] }
  0x45   : > { %v3873_v49 = vsel %vm785_vm3, %v812_v60, %v814_v62  ;;  %v1372_v53 = vrot.slane %v3884_v39, 2  ;;  %v1375_v60 = vrot.slane %v3909_v59, 2 }
  0x46   : > { %2770 = vmatmul.mubr.msk.f32.gmra.mrb[8].mxu1 %vm423_vm2, %v3716_v51  ;;  %v3904_v45 = vsel %vm785_vm3, %v821_v24, %v822_v28  ;;  %v3921_v29 = vsel %vm785_vm3, %v822_v28, %v824_v27  ;;  %v789_v24 = vrot.slane %v3585_v11, 2  ;;  %v1197_v11 = vrot.slane %v3884_v39, 1 }
  0x47   : > { %2888 = vmatmul.mubr.msk.f32.vlgmr.msra.gmra.mrb[0].mxu0 %vm423_vm2, %v3745_v63  ;;  %2772 = vmatprep.mubr.msk.f32.mxu1 %vm423_vm2, %v3748_v0 }
  0x48   : > { %2912 = vmatpush3.msk.msra.mxu0 %vm456_vm0, %v3638_v33  ;;  %2890 = vmatprep.mubr.msk.f32.mxu0 %vm423_vm2, %v3754_v3  ;;  %v1723_v33 = vrot.slane %v354_v17, 1  ;;  %v817_v17 = vrot.slane %v3724_v55, 2 }
  0x49   : > { %2937 = vmatprep.subr.msk.mxu0 %vm456_vm0, %v3777_v14 }
  0x4a   : > { %2773 = vmatmul.mubr.msk.f32.gmra.mrb[10].mxu1 %vm423_vm2, %v3772_v13  ;;  %v3823_v46 = vsel %vm380_vm1, %v1721_v22, %v1723_v33  ;;  %v3877_v23 = vsel %vm785_vm3, %v816_v8, %v817_v17  ;;  %v2476_v33 = vld [vmem:[%s4287_s2 + $0xc] sm:$0xf]  ;;  %v3901_v2 = vsel %vm785_vm3, %v817_v17, %v819_v21  ;;  %v2566_v17 = vld [vmem:[%s4287_s2 + $0x20] sm:$0xf]  ;;  %v786_v21 = vrot.slane %v3570_v4, 2 }
  0x4b   : > { %2891 = vmatmul.mubr.msk.f32.gmra.mrb[2].mxu0 %vm423_vm2, %v3788_v19  ;;  %2775 = vmatprep.mubr.msk.f32.mxu1 %vm423_vm2, %v3791_v20 }
  0x4c   : > { %2893 = vmatprep.mubr.msk.f32.mxu0 %vm423_vm2, %v3805_v37 }
  0x4e   : > { %2776 = vmatmul.mubr.msk.f32.gmra.mrb[12].mxu1 %vm423_vm2, %v3818_v43 }
  0x4f   : > { %2894 = vmatmul.mubr.msk.f32.gmra.mrb[4].mxu0 %vm423_vm2, %v3828_v50  ;;  %2778 = vmatprep.mubr.msk.f32.mxu1 %vm423_vm2, %v3831_v52 }
  0x50   : > { %2896 = vmatprep.mubr.msk.f32.mxu0 %vm423_vm2, %v3840_v58 }
  0x52   : > { %2779 = vmatmul.mubr.msk.f32.gmra.mrb[14].mxu1 %vm423_vm2, %v3851_v41 }
  0x53   : > { %2897 = vmatmul.mubr.msk.f32.gmra.mrb[6].mxu0 %vm423_vm2, %v3856_v61  ;;  %2783 = vmatprep.mubr.msk.f32.mxu1 %vm423_vm2, %v3570_v4 }
  0x54   : > { %2899 = vmatprep.mubr.msk.f32.mxu0 %vm423_vm2, %v3860_v7 }
  0x56   : > { %2784 = vmatmul.mubr.msk.f32.vlgmr.msra.gmra.mrb[0].mxu1 %vm423_vm2, %v3573_v5 }
  0x57   : > { %2808 = vmatpush3.msk.msra.mxu1 %vm456_vm0, %v3648_v35  ;;  %2900 = vmatmul.mubr.msk.f32.gmra.mrb[8].mxu0 %vm423_vm2, %v3873_v49  ;;  %v1373_v35 = vrot.slane %v3887_v40, 2 }
  0x58   : > { %2786 = vmatprep.mubr.msk.f32.mxu1 %vm423_vm2, %v3576_v6  ;;  %2902 = vmatprep.mubr.msk.f32.mxu0 %vm423_vm2, %v3877_v23 }
  0x59   : > { %2833 = vmatprep.subr.msk.mxu1 %vm456_vm0, %v2476_v33  ;;  %v3925_v62 = vsel %vm785_vm3, %v1372_v53, %v1373_v35  ;;  %v3936_v8 = vsel %vm785_vm3, %v1373_v35, %v1375_v60 }
  0x5a   : > { %2787 = vmatmul.mubr.msk.f32.gmra.mrb[2].mxu1 %vm423_vm2, %v3581_v9 }
  0x5b   : > { %2903 = vmatmul.mubr.msk.f32.gmra.mrb[10].mxu0 %vm423_vm2, %v3901_v2  ;;  %2789 = vmatprep.mubr.msk.f32.mxu1 %vm423_vm2, %v3593_v15 }
  0x5c   : > { %2905 = vmatprep.mubr.msk.f32.mxu0 %vm423_vm2, %v3904_v45 }
  0x5e   : > { %2790 = vmatmul.mubr.msk.f32.gmra.mrb[4].mxu1 %vm423_vm2, %v3604_v18 }
  0x5f   : > { %2906 = vmatmul.mubr.msk.f32.gmra.mrb[12].mxu0 %vm423_vm2, %v3921_v29  ;;  %2792 = vmatprep.mubr.msk.f32.mxu1 %vm423_vm2, %v3616_v25 }
  0x60   : > { %2908 = vmatprep.mubr.msk.f32.mxu0 %vm423_vm2, %v3925_v62 }
  0x62   : > { %2793 = vmatmul.mubr.msk.f32.gmra.mrb[6].mxu1 %vm423_vm2, %v3619_v26 }
  0x63   : > { %2909 = vmatmul.mubr.msk.f32.gmra.mrb[14].mxu0 %vm423_vm2, %v3936_v8  ;;  %2795 = vmatprep.mubr.msk.f32.mxu1 %vm423_vm2, %v3630_v31 }
  0x64   : > { %2913 = vmatprep.mubr.msk.f32.mxu0 %vm423_vm2, %v3593_v15 }
  0x66   : > { %2796 = vmatmul.mubr.msk.f32.gmra.mrb[8].mxu1 %vm423_vm2, %v3633_v32 }
  0x67   : > { %2914 = vmatmul.mubr.msk.f32.vlgmr.msra.gmra.mrb[0].mxu0 %vm423_vm2, %v3604_v18  ;;  %2798 = vmatprep.mubr.msk.f32.mxu1 %vm423_vm2, %v3694_v47 }
  0x68   : > { %2938 = vmatpush3.msk.msra.mxu0 %vm456_vm0, %v3777_v14  ;;  %2916 = vmatprep.mubr.msk.f32.mxu0 %vm423_vm2, %v3616_v25  ;;  %v787_v14 = vrot.slane %v3573_v5, 2  ;;  %v4007_v5 = vld [vmem:[%s3767_s14 + $0x18] sm:$0xff]  ;;  %s2249_s14 = sadd.s32 %s2587_s13, %s2586_s11  ;;  %s4190_s11 = scalar_lea.sflag [#allocation3], %s276_s8 }
  0x69   : > { %2963 = vmatprep.subr.msk.mxu0 %vm456_vm0, %v2566_v17  ;;  %s2588_s29 = sshll.u32 %s2249_s14, 7  ;;  %s3225_s13 = scalar_lea.vmem %s4185_s26, 512 }
  0x6a   : > { %2799 = vmatmul.mubr.msk.f32.gmra.mrb[10].mxu1 %vm423_vm2, %v3697_v48  ;;  %v788_v28 = vsel %vm785_vm3, %v786_v21, %v787_v14  ;;  %v790_v4 = vsel %vm785_vm3, %v787_v14, %v789_v24  ;;  %s4183_s12 = scalar_lea.hbm %s4307_s18, %s2588_s29  ;;  %p3226_p8 = scmp.ne.s32.totalorder %s4185_s26, %s3225_s13 }
  0x6b   : > { %2917 = vmatmul.mubr.msk.f32.gmra.mrb[2].mxu0 %vm423_vm2, %v3619_v26  ;;  %2801 = vmatprep.mubr.msk.f32.mxu1 %vm423_vm2, %v3721_v54  ;;  %s3378_s14 = smov [#allocation2]  }
  0x6c   : > { %2919 = vmatprep.mubr.msk.f32.mxu0 %vm423_vm2, %v3630_v31  ;;  %p3227_p9 = pnand %p3226_p8, %p3480_p3  ;;  %s3229_s29 = sshll.u32 %s3378_s14, 4  ;;  %s3230_s29 = int_to_ptr.vmem [resolvable:$false] %s3229_s29 }
  0x6d   : > { %s3231_s28 = scalar_lea.vmem %s3230_s29, 1024  ;;  %p3232_p11 = scmp.lt.s32.totalorder %s4185_s26, %s3230_s29 }
  0x6e   : > { %2802 = vmatmul.mubr.msk.f32.gmra.mrb[12].mxu1 %vm423_vm2, %v3724_v55  ;;  %p3228_p10 = pneg %p3227_p9  ;;  %p3233_p12 = scmp.lt.s32.totalorder %s3231_s28, %s3225_s13 }
  0x6f   : > { %2920 = vmatmul.mubr.msk.f32.gmra.mrb[4].mxu0 %vm423_vm2, %v3633_v32  ;;  %2804 = vmatprep.mubr.msk.f32.mxu1 %vm423_vm2, %v3759_v10 }
  0x70   : > { %2922 = vmatprep.mubr.msk.f32.mxu0 %vm423_vm2, %v3694_v47  ;;  %p3234_p13 = por %p3233_p12, %p3232_p11 }
  0x72   : > { %2805 = vmatmul.mubr.msk.f32.gmra.mrb[14].mxu1 %vm423_vm2, %v3762_v12  ;;  %p3235_p4 = pnand %p3234_p13, %p3228_p10 }
  0x73   : > { %2923 = vmatmul.mubr.msk.f32.gmra.mrb[6].mxu0 %vm423_vm2, %v3697_v48  ;;  %2809 = vmatprep.mubr.msk.f32.mxu1 %vm423_vm2, %v788_v28 }
  0x74   : > { %2925 = vmatprep.mubr.msk.f32.mxu0 %vm423_vm2, %v3721_v54 }
  0x76   : > { %2810 = vmatmul.mubr.msk.f32.vlgmr.msra.gmra.mrb[0].mxu1 %vm423_vm2, %v790_v4 }
  0x77   : > { %2834 = vmatpush3.msk.msra.mxu1 %vm456_vm0, %v2476_v33  ;;  %2926 = vmatmul.mubr.msk.f32.gmra.mrb[8].mxu0 %vm423_vm2, %v3724_v55 }
  0x78   : > { %2812 = vmatprep.mubr.msk.f32.mxu1 %vm423_vm2, %v3727_v56  ;;  %2928 = vmatprep.mubr.msk.f32.mxu0 %vm423_vm2, %v3759_v10 }
  0x79   : > { %2989 = vmatprep.subr.msk.mxu1 %vm456_vm0, %v3535_v1 }
  0x7a   : > { %2813 = vmatmul.mubr.msk.f32.gmra.mrb[2].mxu1 %vm423_vm2, %v3745_v63 }
  0x7b   : > { %2929 = vmatmul.mubr.msk.f32.gmra.mrb[10].mxu0 %vm423_vm2, %v3762_v12  ;;  %2815 = vmatprep.mubr.msk.f32.mxu1 %vm423_vm2, %v3754_v3 }
  0x7c   : > { %2931 = vmatprep.mubr.msk.f32.mxu0 %vm423_vm2, %v3884_v39 }
  0x7e   : > { %2816 = vmatmul.mubr.msk.f32.gmra.mrb[4].mxu1 %vm423_vm2, %v3788_v19 }
  0x7f   : > { %2932 = vmatmul.mubr.msk.f32.gmra.mrb[12].mxu0 %vm423_vm2, %v3887_v40  ;;  %2818 = vmatprep.mubr.msk.f32.mxu1 %vm423_vm2, %v3805_v37 }
  0x80   : > { %2934 = vmatprep.mubr.msk.f32.mxu0 %vm423_vm2, %v4007_v5 }
  0x82   : > { %2819 = vmatmul.mubr.msk.f32.gmra.mrb[6].mxu1 %vm423_vm2, %v3828_v50 }
  0x83   : > { %2935 = vmatmul.mubr.msk.f32.gmra.mrb[14].mxu0 %vm423_vm2, %v3780_v16  ;;  %2821 = vmatprep.mubr.msk.f32.mxu1 %vm423_vm2, %v3840_v58 }
  0x84   : > { %2939 = vmatprep.mubr.msk.f32.mxu0 %vm423_vm2, %v3643_v34  ;;  %v1198_v34 = vrot.slane %v3887_v40, 1 }
  0x86   : > { %2822 = vmatmul.mubr.msk.f32.gmra.mrb[8].mxu1 %vm423_vm2, %v3856_v61 }
  0x87   : > { %2940 = vmatmul.mubr.msk.f32.vlgmr.msra.gmra.mrb[0].mxu0 %vm423_vm2, %v3659_v36  ;;  %2824 = vmatprep.mubr.msk.f32.mxu1 %vm423_vm2, %v3860_v7  ;;  %v1720_v36 = vrot.slane %v4007_v5, 1 }
  0x88   : > { %2964 = vmatpush3.msk.msra.mxu0 %vm456_vm0, %v2566_v17  ;;  %2942 = vmatprep.mubr.msk.f32.mxu0 %vm423_vm2, %v3665_v38  ;;  %v1199_v38 = vsel %vm380_vm1, %v1197_v11, %v1198_v34 }
  0x8a   : > { %2825 = vmatmul.mubr.msk.f32.gmra.mrb[10].mxu1 %vm423_vm2, %v3873_v49 }
  0x8b   : > { %2943 = vmatmul.mubr.msk.f32.gmra.mrb[2].mxu0 %vm423_vm2, %v3685_v42  ;;  %2827 = vmatprep.mubr.msk.f32.mxu1 %vm423_vm2, %v3877_v23 }
  0x8c   : > { %2945 = vmatprep.mubr.msk.f32.mxu0 %vm423_vm2, %v3689_v44 }
  0x8e   : > { %2828 = vmatmul.mubr.msk.f32.gmra.mrb[12].mxu1 %vm423_vm2, %v3901_v2 }
  0x8f   : > { %2946 = vmatmul.mubr.msk.f32.gmra.mrb[4].mxu0 %vm423_vm2, %v3716_v51  ;;  %2830 = vmatprep.mubr.msk.f32.mxu1 %vm423_vm2, %v3904_v45  ;;  %v3377_v51 = vmov 1966171168  }
  0x90   : > { %2948 = vmatprep.mubr.msk.f32.mxu0 %vm423_vm2, %v3748_v0 }
  0x92   : > { %2831 = vmatmul.mubr.msk.f32.gmra.mrb[14].mxu1 %vm423_vm2, %v3921_v29 }
  0x93   : > { %2949 = vmatmul.mubr.msk.f32.gmra.mrb[6].mxu0 %vm423_vm2, %v3772_v13  ;;  %2835 = vmatprep.mubr.msk.f32.mxu1 %vm423_vm2, %v3576_v6  ;;  %v1200_v6 = vrot.slane %v3909_v59, 1 }
  0x94   : > { %2951 = vmatprep.mubr.msk.f32.mxu0 %vm423_vm2, %v3791_v20 }
  0x96   : > { %2836 = vmatmul.mubr.msk.f32.vlgmr.msra.gmra.mrb[0].mxu1 %vm423_vm2, %v3581_v9  ;;  %v1722_v9 = vsel %vm380_vm1, %v1720_v36, %v1721_v22 }
  0x97   : > { %2990 = vmatpush3.msk.msra.mxu1 %vm456_vm0, %v3535_v1  ;;  %2952 = vmatmul.mubr.msk.f32.gmra.mrb[8].mxu0 %vm423_vm2, %v3818_v43  ;;  %v1201_v1 = vsel %vm380_vm1, %v1198_v34, %v1200_v6 }
  0x98   : > { %2838 = vmatprep.mubr.msk.f32.mxu1 %vm423_vm2, %v3593_v15  ;;  %2954 = vmatprep.mubr.msk.f32.mxu0 %vm423_vm2, %v3831_v52  ;;  %v1895_v15 = vrot.slane %v4007_v5, 2 }
  0x9a   : > { %2839 = vmatmul.mubr.msk.f32.gmra.mrb[2].mxu1 %vm423_vm2, %v3604_v18  ;;  %v1897_v18 = vsel %vm785_vm3, %v1895_v15, %v1896_v30 }
  0x9b   : > { %2955 = vmatmul.mubr.msk.f32.gmra.mrb[10].mxu0 %vm423_vm2, %v3851_v41  ;;  %2841 = vmatprep.mubr.msk.f32.mxu1 %vm423_vm2, %v3616_v25 }
  0x9c   : > { %2957 = vmatprep.mubr.msk.f32.mxu0 %vm423_vm2, %v1199_v38 }
  0x9e   : > { %2842 = vmatmul.mubr.msk.f32.gmra.mrb[4].mxu1 %vm423_vm2, %v3619_v26 }
  0x9f   : > { %2958 = vmatmul.mubr.msk.f32.gmra.mrb[12].mxu0 %vm423_vm2, %v1201_v1  ;;  %2844 = vmatprep.mubr.msk.f32.mxu1 %vm423_vm2, %v3630_v31 }
  0xa0   : > { %2960 = vmatprep.mubr.msk.f32.mxu0 %vm423_vm2, %v1722_v9 }
  0xa2   : > { %2845 = vmatmul.mubr.msk.f32.gmra.mrb[6].mxu1 %vm423_vm2, %v3633_v32 }
  0xa3   : > { %2961 = vmatmul.mubr.msk.f32.gmra.mrb[14].mxu0 %vm423_vm2, %v3823_v46  ;;  %2847 = vmatprep.mubr.msk.f32.mxu1 %vm423_vm2, %v3694_v47 }
  0xa4   : > { %2965 = vmatprep.mubr.msk.f32.mxu0 %vm423_vm2, %v3754_v3 }
  0xa6   : > { %2848 = vmatmul.mubr.msk.f32.gmra.mrb[8].mxu1 %vm423_vm2, %v3697_v48 }
  0xa7   : > { %2966 = vmatmul.mubr.msk.f32.vlgmr.msra.gmra.mrb[0].mxu0 %vm423_vm2, %v3788_v19  ;;  %2850 = vmatprep.mubr.msk.f32.mxu1 %vm423_vm2, %v3721_v54  ;;  %v2079_v54 = vunpack.c.l.s4 %v3377_v51 }
  0xa8   : > { %2968 = vmatprep.mubr.msk.f32.mxu0 %vm423_vm2, %v3805_v37 }
  0xa9   : > { %v2080_v3 = vunpack.c.0.s8 %v2079_v54 }
  0xaa   : > { %2851 = vmatmul.mubr.msk.f32.gmra.mrb[10].mxu1 %vm423_vm2, %v3724_v55  ;;  %v2081_v55 = vlaneseq }
  0xab   : > { %2969 = vmatmul.mubr.msk.f32.gmra.mrb[2].mxu0 %vm423_vm2, %v3828_v50  ;;  %2853 = vmatprep.mubr.msk.f32.mxu1 %vm423_vm2, %v3759_v10 }
  0xac   : > { %2971 = vmatprep.mubr.msk.f32.mxu0 %vm423_vm2, %v3840_v58  ;;  %v2082_v10 = vshrl.u32 %v2081_v55, 7 }
  0xae   : > { %2854 = vmatmul.mubr.msk.f32.gmra.mrb[12].mxu1 %vm423_vm2, %v3762_v12  ;;  %v4159_v19 = vsub.s32 %v2080_v3, %v2082_v10 }
  0xaf   : > { %2972 = vmatmul.mubr.msk.f32.gmra.mrb[4].mxu0 %vm423_vm2, %v3856_v61  ;;  %2856 = vmatprep.mubr.msk.f32.mxu1 %vm423_vm2, %v3884_v39 }
  0xb0   : > { %2974 = vmatprep.mubr.msk.f32.mxu0 %vm423_vm2, %v3860_v7 }
  0xb2   : > { %2857 = vmatmul.mubr.msk.f32.gmra.mrb[14].mxu1 %vm423_vm2, %v3887_v40 }
  0xb3   : > { %2975 = vmatmul.mubr.msk.f32.gmra.mrb[6].mxu0 %vm423_vm2, %v3873_v49  ;;  %2873 = vmatprep.mubr.msk.f32.mxu1 %vm423_vm2, %v3748_v0 }
  0xb4   : > { %2977 = vmatprep.mubr.msk.f32.mxu0 %vm423_vm2, %v3877_v23 }
  0xb6   : > { %2874 = vmatmul.mubr.msk.f32.vlgmr.msra.gmra.mrb[8].mxu1 %vm423_vm2, %v3772_v13 }
  0xb7   : > { %2978 = vmatmul.mubr.msk.f32.gmra.mrb[8].mxu0 %vm423_vm2, %v3901_v2  ;;  %2876 = vmatprep.mubr.msk.f32.mxu1 %vm423_vm2, %v3791_v20 }
  0xb8   : > { %2980 = vmatprep.mubr.msk.f32.mxu0 %vm423_vm2, %v3904_v45 }
  0xba   : > { %2877 = vmatmul.mubr.msk.f32.gmra.mrb[10].mxu1 %vm423_vm2, %v3818_v43 }
  0xbb   : > { %2981 = vmatmul.mubr.msk.f32.gmra.mrb[10].mxu0 %vm423_vm2, %v3921_v29  ;;  %2879 = vmatprep.mubr.msk.f32.mxu1 %vm423_vm2, %v3831_v52 }
  0xbc   : > { %2983 = vmatprep.mubr.msk.f32.mxu0 %vm423_vm2, %v3925_v62 }
  0xbe   : > { %2880 = vmatmul.mubr.msk.f32.gmra.mrb[12].mxu1 %vm423_vm2, %v3851_v41 }
  0xbf   : > { %2984 = vmatmul.mubr.msk.f32.gmra.mrb[12].mxu0 %vm423_vm2, %v3936_v8  ;;  %2882 = vmatprep.mubr.msk.f32.mxu1 %vm423_vm2, %v1199_v38 }
  0xc0   : > { %2986 = vmatprep.mubr.msk.f32.mxu0 %vm423_vm2, %v1897_v18 }
  0xc2   : > { %2883 = vmatmul.mubr.msk.f32.gmra.mrb[14].mxu1 %vm423_vm2, %v1201_v1 }
  0xc3   : > { %2987 = vmatmul.mubr.msk.f32.gmra.mrb[14].mxu0 %vm423_vm2, %v3837_v57 }
 0x169   : > { %v2837_v25 = vpop.f32.mrb[0].mxu1 }
 0x16a   : > { %v1101_v26 = vpop.f32.mrb[1].mxu1 }
 0x16d   : > { %v2840_v31 = vpop.f32.mrb[2].mxu1 }
 0x16e   : > { %v1111_v32 = vpop.f32.mrb[3].mxu1 }
 0x171   : > { %v2843_v42 = vpop.f32.mrb[4].mxu1 }
 0x172   : > { %v1121_v44 = vpop.f32.mrb[5].mxu1 }
 0x175   : > { %v2846_v47 = vpop.f32.mrb[6].mxu1 }
 0x176   : > { %v1131_v48 = vpop.f32.mrb[7].mxu1 }
 0x17a   : > { %v2967_v56 = vpop.f32.mrb[0].mxu0 }
 0x17b   : > { %v2991_v63 = vadd.f32 %v2967_v56, %v2837_v25  ;;  %v1975_v0 = vpop.f32.mrb[1].mxu0 }
 0x17c   : > { %v2992_v12 = vadd.f32 %v1975_v0, %v1101_v26 }
 0x17e   : > { %v2970_v13 = vpop.f32.mrb[2].mxu0 }
 0x17f   : > { %v2993_v16 = vadd.f32 %v2970_v13, %v2840_v31  ;;  %v1985_v20 = vpop.f32.mrb[3].mxu0 }
 0x180   : > { %v2994_v22 = vadd.f32 %v1985_v20, %v1111_v32 }
 0x181   : > { %v2071_v30 = vmax.f32 %v2991_v63, %v2993_v16 }
 0x182   : > { %v2070_v37 = vmax.f32 %v2992_v12, %v2994_v22  ;;  %v2973_v43 = vpop.f32.mrb[4].mxu0 }
 0x183   : > { %v2091_v46 = vrot.slane %v2071_v30, %v4159_v19  ;;  %v2995_v50 = vadd.f32 %v2973_v43, %v2843_v42  ;;  %v1995_v52 = vpop.f32.mrb[5].mxu0 }
 0x184   : > { %v2084_v57 = vrot.slane %v2070_v37, %v4159_v19  ;;  %v2996_v58 = vadd.f32 %v1995_v52, %v1121_v44 }
 0x185   : > { %v2143_v41 = vrot.slane %v2091_v46, 4 }
 0x186   : > { %v2142_v61 = vrot.slane %v2084_v57, 4  ;;  %v2976_v7 = vpop.f32.mrb[6].mxu0 }
 0x187   : > { %v2159_v49 = vmax.f32 %v2091_v46, %v2143_v41  ;;  %v2997_v23 = vadd.f32 %v2976_v7, %v2846_v47  ;;  %v2005_v39 = vpop.f32.mrb[7].mxu0 }
 0x188   : > { %v2158_v40 = vmax.f32 %v2084_v57, %v2142_v61  ;;  %v2998_v33 = vadd.f32 %v2005_v39, %v1131_v48 }
 0x189   : > { %v2196_v2 = vmul.f32 %v2159_v49, %v2159_v49  ;;  %v2073_v27 = vmax.f32 %v2995_v50, %v2997_v23  ;;  %v2875_v45 = vpop.f32.mrb[8].mxu1 }
 0x18a   : > { %v2174_v53 = vcombine.low %v2158_v40, %v2159_v49  ;;  %v2195_v35 = vmul.f32 %v2158_v40, %v2158_v40  ;;  %v2072_v59 = vmax.f32 %v2996_v58, %v2998_v33  ;;  %v2979_v29 = vpop.f32.mrb[8].mxu0  ;;  %v1317_v60 = vpop.f32.mrb[9].mxu1 }
 0x18b   : > { %v2105_v62 = vrot.slane %v2073_v27, %v4159_v19  ;;  %v2999_v8 = vadd.f32 %v2979_v29, %v2875_v45  ;;  %v2015_v17 = vpop.f32.mrb[9].mxu0 }
 0x18c   : > { %2182 = vst [vmem:[%s4167_s27] sm:$0xff] %v2174_v53  ;;  %v2211_v21 = vcombine.low %v2195_v35, %v2196_v2  ;;  %v2098_v14 = vrot.slane %v2072_v59, %v4159_v19  ;;  %v3000_v24 = vadd.f32 %v2015_v17, %v1317_v60 }
 0x18d   : > { %v2145_v28 = vrot.slane %v2105_v62, 4  ;;  %v2878_v4 = vpop.f32.mrb[10].mxu1 }
 0x18e   : > { %v2144_v5 = vrot.slane %v2098_v14, 4  ;;  %v2982_v11 = vpop.f32.mrb[10].mxu0  ;;  %v1327_v34 = vpop.f32.mrb[11].mxu1 }
 0x18f   : > { %v2161_v6 = vmax.f32 %v2105_v62, %v2145_v28  ;;  %v3001_v36 = vadd.f32 %v2982_v11, %v2878_v4  ;;  %v2025_v38 = vpop.f32.mrb[11].mxu0 }
 0x190   : > { %v2160_v1 = vmax.f32 %v2098_v14, %v2144_v5  ;;  %v3002_v9 = vadd.f32 %v2025_v38, %v1327_v34 }
 0x191   : > { %v2198_v15 = vmul.f32 %v2161_v6, %v2161_v6  ;;  %v2075_v18 = vmax.f32 %v2999_v8, %v3001_v36  ;;  %v2881_v25 = vpop.f32.mrb[12].mxu1 }
 0x192   : > { %v2175_v26 = vcombine.low %v2160_v1, %v2161_v6  ;;  %v2197_v31 = vmul.f32 %v2160_v1, %v2160_v1  ;;  %v2074_v32 = vmax.f32 %v3000_v24, %v3002_v9  ;;  %v2985_v42 = vpop.f32.mrb[12].mxu0  ;;  %v1337_v44 = vpop.f32.mrb[13].mxu1 }
 0x193   : > { %v2119_v47 = vrot.slane %v2075_v18, %v4159_v19  ;;  %v3003_v48 = vadd.f32 %v2985_v42, %v2881_v25  ;;  %v2035_v51 = vpop.f32.mrb[13].mxu0 }
 0x194   : > { %2183 = vst [vmem:[%s4167_s27 + $0x8] sm:$0xff] %v2175_v26  ;;  %v2186_v54 = vadd.f32 %v2175_v26, %v2174_v53  ;;  %v2212_v55 = vcombine.low %v2197_v31, %v2198_v15  ;;  %v2112_v56 = vrot.slane %v2074_v32, %v4159_v19  ;;  %v3004_v63 = vadd.f32 %v2035_v51, %v1337_v44 }
 0x195   : > { %v2147_v0 = vrot.slane %v2119_v47, 4  ;;  %v2884_v3 = vpop.f32.mrb[14].mxu1 }
 0x196   : > { %v2219_v10 = vadd.f32 %v2212_v55, %v2211_v21  ;;  %v2146_v12 = vrot.slane %v2112_v56, 4  ;;  %v2988_v13 = vpop.f32.mrb[14].mxu0  ;;  %v1347_v16 = vpop.f32.mrb[15].mxu1 }
 0x197   : > { %v2163_v20 = vmax.f32 %v2119_v47, %v2147_v0  ;;  %v3005_v22 = vadd.f32 %v2988_v13, %v2884_v3  ;;  %v2045_v30 = vpop.f32.mrb[15].mxu0 }
 0x198   : > { %v2162_v37 = vmax.f32 %v2112_v56, %v2146_v12  ;;  %v3006_v43 = vadd.f32 %v2045_v30, %v1347_v16 }
 0x199   : > { %v2200_v46 = vmul.f32 %v2163_v20, %v2163_v20  ;;  %v2077_v50 = vmax.f32 %v3003_v48, %v3005_v22 }
 0x19a   : > { %v2176_v52 = vcombine.low %v2162_v37, %v2163_v20  ;;  %v2199_v57 = vmul.f32 %v2162_v37, %v2162_v37  ;;  %v2076_v58 = vmax.f32 %v3004_v63, %v3006_v43 }
 0x19b   : > { %v2133_v41 = vrot.slane %v2077_v50, %v4159_v19 }
 0x19c   : > { %2184 = vst [vmem:[%s4167_s27 + $0x10] sm:$0xff] %v2176_v52  ;;  %v2187_v61 = vadd.f32 %v2186_v54, %v2176_v52  ;;  %v2213_v7 = vcombine.low %v2199_v57, %v2200_v46  ;;  %v2126_v49 = vrot.slane %v2076_v58, %v4159_v19 }
 0x19d   : > { %v2149_v23 = vrot.slane %v2133_v41, 4 }
 0x19e   : > { %v2220_v39 = vadd.f32 %v2219_v10, %v2213_v7  ;;  %v2148_v40 = vrot.slane %v2126_v49, 4 }
 0x19f   : > { %v2165_v33 = vmax.f32 %v2133_v41, %v2149_v23 }
 0x1a0   : > { %v2164_v2 = vmax.f32 %v2126_v49, %v2148_v40 }
 0x1a1   : > { %v2202_v27 = vmul.f32 %v2165_v33, %v2165_v33 }
 0x1a2   : > { %v2177_v19 = vcombine.low %v2164_v2, %v2165_v33  ;;  %v2201_v45 = vmul.f32 %v2164_v2, %v2164_v2 }
 0x1a4   : > { %2185 = vst [vmem:[%s4167_s27 + $0x18] sm:$0xff] %v2177_v19  ;;  %v2188_v53 = vadd.f32 %v2187_v61, %v2177_v19  ;;  %v2214_v35 = vcombine.low %v2201_v45, %v2202_v27 }
 0x1a5   : > { %3238 = shalt.err (!%p3235_p4)
}
 0x1a6   : > { %s3239_s8 = scalar_lea.hbm %s4183_s12, 512  ;;  %s3243_s18 = scalar_lea.hbm %s4308_s5, 2048 }
 0x1a7   : > { %p3240_p2 = scmp.ne.s32.totalorder %s4183_s12, %s3239_s8  ;;  %p3244_p8 = scmp.lt.u32.totalorder %s4183_s12, %s4308_s5 }
 0x1a8   : > { %p3245_p9 = scmp.lt.u32.totalorder %s3243_s18, %s3239_s8  ;;  %p3247_p11 = scmp.lt.u32.totalorder %s3239_s8, %s4183_s12 }
 0x1a9   : > { %p3241_p5 = pnand %p3240_p2, %p3480_p3 }
 0x1aa   : > { %p3246_p10 = por %p3245_p9, %p3244_p8 }
 0x1ab   : > { %p3242_p6 = pneg %p3241_p5 }
 0x1ac   : > { %p3248_p12 = por %p3247_p11, %p3246_p10 }
 0x1ae   : > { %p3249_p13 = pnand %p3248_p12, %p3242_p6 }
 0x1b0   : > { %3252 = shalt.err (!%p3249_p13)
}
 0x1b1   : > { %s3379_s13 = smov 128   ;;  %s3380_s28 = smov 8   ;;  %v2189_v59 = vrot.slane %v2188_v53, 4  ;;  %v2221_v29 = vadd.f32 %v2220_v39, %v2214_v35  ;;  %vm2228_vm4 = vcmask 1040384  }
 0x1b2   : > { %3122 = dma.vmem_to_hbm [thread:$0]  (%p3480_p3), %s4185_s26, 512, %s4183_s12, %s4190_s11, %s3379_s13, %s3379_s13, %s3380_s28  }
 0x1b3   : > { %s283_s27 = sand.u32 1, %s3339_s16   ;;  %v2190_v60 = vadd.f32 %v2189_v59, %v2188_v53  ;;  %v2222_v62 = vrot.slane %v2221_v29, 4  ;;  %s2589_s30 = sshll.u32 %s3363_s22, 1 }
 0x1b4   : > { %s2417_s8 = sshll.u32 %s283_s27, 1  ;;  %s2263_s18 = sadd.s32 %s3359_s21, %s2589_s30 }
 0x1b5   : > { %v2191_v8 = vrot.slane %v2190_v60, 2  ;;  %v2223_v17 = vadd.f32 %v2222_v62, %v2221_v29  ;;  %s2590_s14 = sshll.u32 %s2263_s18, 5  ;;  %s285_s29 = scalar_lea.vmem [#allocation4], %s2417_s8 }
 0x1b6   : > { %s2270_s7 = sshll.u32 %s285_s29, 4  ;;  %s4309_s11 = sld [smem:[#allocation12_spill]]  ;;  %s4222_s7 = int_to_ptr.vmem [resolvable:$true] %s2270_s7 }
 0x1b7   : > { %v2192_v21 = vadd.f32 %v2191_v8, %v2190_v60  ;;  %v2224_v14 = vrot.slane %v2223_v17, 2  ;;  %s2237_s21 = scalar_lea.sflag [#allocation5], %s283_s27  ;;  %s3253_s22 = scalar_lea.vmem %s4222_s7, 32 }
 0x1b8   : > { %p3254_p3 = scmp.ne.s32.totalorder %s4222_s7, %s3253_s22  ;;  %s3381_s28 = smov [#allocation4]  }
 0x1b9   : > { %v2193_v24 = vrot.slane %v2192_v21, 1  ;;  %v2225_v28 = vadd.f32 %v2224_v14, %v2223_v17  ;;  %s3257_s8 = sshll.u32 %s3381_s28, 4  ;;  %s3258_s8 = int_to_ptr.vmem [resolvable:$false] %s3257_s8 }
 0x1ba   : > { %p3255_p4 = pnand %p3254_p3, %p3519_p0  ;;  %s3259_s30 = scalar_lea.vmem %s3258_s8, 64 }
 0x1bb   : > { %v2226_v4 = vrot.slane %v2225_v28, 1  ;;  %v2194_v5 = vadd.f32 %v2193_v24, %v2192_v21  ;;  %p3260_p5 = scmp.lt.s32.totalorder %s4222_s7, %s3258_s8  ;;  %p3261_p6 = scmp.lt.s32.totalorder %s3259_s30, %s3253_s22 }
 0x1bc   : > { %s4220_s13 = scalar_lea.hbm %s4309_s11, %s2590_s14  ;;  %p3256_p2 = pneg %p3255_p4 }
 0x1bd   : > { %v2227_v11 = vadd.f32 %v2226_v4, %v2225_v28  ;;  %p3262_p8 = por %p3261_p6, %p3260_p5 }
 0x1bf   : > { %v2229_v34 = vsel %vm2228_vm4, %v2194_v5, %v2227_v11  ;;  %p3263_p9 = pnand %p3262_p8, %p3256_p2 }
 0x1c0   : > { %2230 = vst [vmem:[%s285_s29] sm:$0x3] %v2229_v34 }
 0x1c1   : > { %3266 = shalt.err (!%p3263_p9)
}
 0x1c2   : > { %s3267_s27 = scalar_lea.hbm %s4220_s13, 32  ;;  %s3271_s29 = scalar_lea.hbm %s4309_s11, 128 }
 0x1c3   : > { %p3268_p10 = scmp.ne.s32.totalorder %s4220_s13, %s3267_s27  ;;  %p3272_p13 = scmp.lt.u32.totalorder %s4220_s13, %s4309_s11 }
 0x1c4   : > { %p3273_p3 = scmp.lt.u32.totalorder %s3271_s29, %s3267_s27  ;;  %p3275_p2 = scmp.lt.u32.totalorder %s3267_s27, %s4220_s13 }
 0x1c5   : > { %p3269_p11 = pnand %p3268_p10, %p3519_p0 }
 0x1c6   : > { %p3274_p4 = por %p3273_p3, %p3272_p13 }
 0x1c7   : > { %p3270_p12 = pneg %p3269_p11 }
 0x1c8   : > { %p3276_p5 = por %p3275_p2, %p3274_p4 }
 0x1ca   : > { %p3277_p6 = pnand %p3276_p5, %p3270_p12 }
 0x1cc   : > { %3280 = shalt.err (!%p3277_p6)
}
 0x1cd   : > { %3123 = dma.vmem_to_hbm [thread:$0]  (%p3519_p0), %s4222_s7, 32, %s4220_s13, %s2237_s21  }
 0x1ce PF: > { %s4310_s22 = sld [smem:[#allocation8_spill]]  ;;  %p3133_p8 = scmp.ge.s32.totalorder %s3375_s25, 2 }
 0x1d0   : > { %p3127_p9 = pnand %p3133_p8, %p3495_p7 }
 0x1d4   : > { %s2282_s28 = sand.u32 1, %s4310_s22  }
 0x1d5   : > { %s2283_s8 = scalar_lea.sflag [#allocation3], %s2282_s28 }
 0x1d6   : > { %3326 = dma.done.wait (!%p3127_p9), %s2283_s8, 512  }
 0x1d7   : > { %3328 = vsyncadd (!%p3127_p9), %s2283_s8, 4294966784  ;;  %s2291_s30 = sand.u32 1, %s3335_s15   ;;  %p3130_p10 = pnand %p3133_p8, %p3525_p1 }
 0x1d8   : > { %s2292_s9 = scalar_lea.sflag [#allocation5], %s2291_s30 }
 0x1d9   : > { %3330 = dma.done.wait (!%p3130_p10), %s2292_s9, 32  }
 0x1da   : > { %3332 = vsyncadd (!%p3130_p10), %s2292_s9, 4294967264  ;;  %s21_s25 = sadd.s32 1, %s3375_s25   ;;  %s4311_s10 = sld [smem:[#allocation9_spill]] }
 0x1db   : > { %p18_p0 = scmp.ge.s32.totalorder %s21_s25, 6   ;;  %s4312_s7 = sld [smem:[#allocation10_spill]] }
 0x1dc   : > { %s4313_s15 = smov %s3339_s16  ;;  %s4314_s16 = smov %s3343_s17 }
 0x1dd   : > { %s4315_s17 = smov %s3509_s3  ;;  %s4316_s18 = smov %s3351_s19 }
 0x1de   : > { %s4317_s19 = smov %s3355_s20  ;;  %s4318_s20 = smov %s3506_s4 }
 0x1df   : > { %s4319_s21 = smov %s3367_s23  ;;  %s4320_s22 = smov %s3371_s24 }
 0x1e0   : > { %s4321_s23 = smov %s4311_s10  ;;  %20 = sbr.rel (!%p18_p0) target bundleno = 12 (0xc), region = 95 }
 0x1e1   : > { %s4322_s24 = smov %s4312_s7 }
 0x1e7   :  { %2297 = vsyncpa [#allocation3], 1 }
 0x1e8   :  { %2299 = vsyncpa [#allocation3 + $0x1], 1 }
 0x1e9   :  { %2300 = vsyncpa [#allocation5], 1 }
 0x1ea   :  { %2302 = vsyncpa [#allocation5 + $0x1], 1 }

</bundles_post_ra>
